<compile_context>
chip_gen: v7x
topology: tpu7x:2x2x1
jax: 0.10.0
libtpu: 0.0.40
codegen_flags: <defaults>
</compile_context>

<pallas_src>
import jax
import jax.numpy as jnp
from jax.experimental import pallas as pl
from jax.experimental.pallas import tpu as pltpu

EPS = 1e-5


def gate_block_kernel(f1_ref, f2_ref, w_ref, p_ref, o_ref):
    # f1_ref/f2_ref/o_ref: (N, D) f32 views for one graph (batch dim squeezed).
    f1 = f1_ref[...]
    f2 = f2_ref[...]
    n, d = f1.shape

    # Packed per-feature params: row0 = linear bias, row1 = gamma, row2 = beta,
    # row3 = mean_scale.
    p = p_ref[...]
    lin_b = p[0:1, :]
    gamma = p[1:2, :]
    beta = p[2:3, :]
    ms = p[3:4, :]

    # Gate linear on the folded weight (bf16 MXU inputs, f32 accumulation):
    #   z = f2 @ (W1+W3) + f1 @ (W2-W3) + b
    w_f2 = w_ref[0:d, :]        # (D, D) bf16
    w_f1 = w_ref[d:2 * d, :]    # (D, D) bf16
    z = (jnp.dot(f2.astype(jnp.bfloat16), w_f2, preferred_element_type=jnp.float32)
         + jnp.dot(f1.astype(jnp.bfloat16), w_f1, preferred_element_type=jnp.float32)
         + lin_b)

    g = jax.nn.sigmoid(z)
    h = g * f2 + f1                                            # f32

    # GraphNorm over the node axis (one graph per grid step), all f32.
    inv_n = 1.0 / n
    mean = jnp.sum(h, axis=0, keepdims=True) * inv_n           # (1, D)
    centered = h - mean * ms                                   # (N, D)
    var = jnp.sum(centered * centered, axis=0, keepdims=True) * inv_n
    inv_std = jax.lax.rsqrt(var + EPS)
    o_ref[...] = gamma * centered * inv_std + beta


def gate_block(f1, f2, w, b, gamma, beta, mean_scale):
    """f1, f2: (B, N, D) f32.  w: (3D, D) f32 (PyTorch W^T).  Per-feature params: (1, D)."""
    B, N, D = f1.shape

    # One-time weight folding (f32), then cast to bf16 for the MXU.
    w1, w2, w3 = w[:D], w[D:2 * D], w[2 * D:]
    w_folded = jnp.concatenate([w1 + w3, w2 - w3], axis=0).astype(jnp.bfloat16)  # (2D, D)

    # Pack the four per-feature vectors into a single (4, D) array.
    params = jnp.concatenate([b, gamma, beta, mean_scale], axis=0)               # (4, D)

    node_spec = pl.BlockSpec((None, N, D), lambda g: (g, 0, 0))   # batch dim squeezed
    full2 = lambda shape: pl.BlockSpec(shape, lambda g: (0, 0))

    return pl.pallas_call(
        gate_block_kernel,
        out_shape=jax.ShapeDtypeStruct((B, N, D), jnp.float32),
        grid=(B,),
        in_specs=[
            node_spec,                # f1
            node_spec,                # f2
            full2((2 * D, D)),        # folded weight (bf16)
            full2((4, D)),            # packed params (bias, gamma, beta, mean_scale)
        ],
        out_specs=node_spec,
        compiler_params=pltpu.CompilerParams(
            dimension_semantics=("parallel",)),   # shards graphs across TCs on v7x
    )(f1, f2, w_folded, params)


def gate_block_ref(f1, f2, w, b, gamma, beta, mean_scale):
    """Pure-f32 reference matching the PyTorch module (eval mode)."""
    cat = jnp.concatenate([f2, f1, f2 - f1], axis=-1)          # (B, N, 3D)
    g = jax.nn.sigmoid(cat @ w + b)
    h = g * f2 + f1
    mean = jnp.mean(h, axis=1, keepdims=True)
    c = h - mean * mean_scale
    var = jnp.mean(c * c, axis=1, keepdims=True)
    return gamma * c / jnp.sqrt(var + EPS) + beta


if __name__ == "__main__":
    B, N, D = 8, 16, 32  # graphs, nodes per graph, feature dim (dim_tmp)

    key = jax.random.PRNGKey(0)
    k1, k2, k3, k4 = jax.random.split(key, 4)

    f1 = jax.random.normal(k1, (B, N, D), dtype=jnp.float32)
    f2 = jax.random.normal(k2, (B, N, D), dtype=jnp.float32)

    # Deterministic parameter init (synthetic; Linear-like scaling for W/b).
    bound = 1.0 / jnp.sqrt(3.0 * D)
    w = jax.random.uniform(k3, (3 * D, D), jnp.float32, -bound, bound)
    b = jax.random.uniform(k4, (1, D), jnp.float32, -bound, bound)
    gamma = jnp.ones((1, D), jnp.float32)        # GraphNorm.weight
    beta = jnp.zeros((1, D), jnp.float32)        # GraphNorm.bias
    mean_scale = jnp.ones((1, D), jnp.float32)   # GraphNorm.mean_scale

    out = gate_block(f1, f2, w, b, gamma, beta, mean_scale)
    out = jax.block_until_ready(out)

    ref = gate_block_ref(f1, f2, w, b, gamma, beta, mean_scale)
    # Tolerance accounts for the deliberate bf16 MXU-input precision tradeoff
    # (accumulation and GraphNorm remain f32).
    assert jnp.allclose(out, ref, atol=2e-2, rtol=2e-2), "mismatch vs reference"

    print("KERNEL_OK")
</pallas_src>

<mosaic_0001>
module attributes {stable_mosaic.version = 11 : i64} {
  func.func @gate_block_kernel(%arg0: i32, %arg1: memref<1x16x32xf32, #tpu.memory_space<vmem>>, %arg2: memref<1x16x32xf32, #tpu.memory_space<vmem>>, %arg3: memref<64x32xbf16, #tpu.memory_space<vmem>>, %arg4: memref<4x32xf32, #tpu.memory_space<vmem>>, %arg5: memref<1x16x32xf32, #tpu.memory_space<vmem>>) attributes {dimension_semantics = [#tpu.dimension_semantics<parallel>], iteration_bounds = array<i64: 8>, scalar_prefetch = 0 : i64, scratch_operands = 0 : i64, tpu.core_type = #tpu.core_type<tc>, window_params = [{transform_indices = @transform_0, window_bounds = array<i64: 1, 16, 32>}, {transform_indices = @transform_1, window_bounds = array<i64: 1, 16, 32>}, {pipeline_mode = #tpu.pipeline_mode<synchronous>, transform_indices = @transform_2, window_bounds = array<i64: 64, 32>}, {pipeline_mode = #tpu.pipeline_mode<synchronous>, transform_indices = @transform_3, window_bounds = array<i64: 4, 32>}, {transform_indices = @transform_4, window_bounds = array<i64: 1, 16, 32>}]} {
    %c0 = arith.constant 0 : index
    %c0_0 = arith.constant 0 : index
    %c0_1 = arith.constant 0 : index
    %0 = vector.load %arg1[%c0, %c0_0, %c0_1] : memref<1x16x32xf32, #tpu.memory_space<vmem>>, vector<1x16x32xf32>
    %1 = vector.shape_cast %0 : vector<1x16x32xf32> to vector<16x32xf32>
    %c0_2 = arith.constant 0 : index
    %c0_3 = arith.constant 0 : index
    %c0_4 = arith.constant 0 : index
    %2 = vector.load %arg2[%c0_2, %c0_3, %c0_4] : memref<1x16x32xf32, #tpu.memory_space<vmem>>, vector<1x16x32xf32>
    %3 = vector.shape_cast %2 : vector<1x16x32xf32> to vector<16x32xf32>
    %c0_5 = arith.constant 0 : index
    %c0_6 = arith.constant 0 : index
    %4 = vector.load %arg4[%c0_5, %c0_6] : memref<4x32xf32, #tpu.memory_space<vmem>>, vector<4x32xf32>
    %5 = vector.extract_strided_slice %4 {offsets = [0, 0], sizes = [1, 32], strides = [1, 1]} : vector<4x32xf32> to vector<1x32xf32>
    %6 = vector.extract_strided_slice %4 {offsets = [1, 0], sizes = [1, 32], strides = [1, 1]} : vector<4x32xf32> to vector<1x32xf32>
    %7 = vector.extract_strided_slice %4 {offsets = [2, 0], sizes = [1, 32], strides = [1, 1]} : vector<4x32xf32> to vector<1x32xf32>
    %8 = vector.extract_strided_slice %4 {offsets = [3, 0], sizes = [1, 32], strides = [1, 1]} : vector<4x32xf32> to vector<1x32xf32>
    %c0_7 = arith.constant 0 : index
    %c0_8 = arith.constant 0 : index
    %9 = vector.load %arg3[%c0_7, %c0_8] : memref<64x32xbf16, #tpu.memory_space<vmem>>, vector<32x32xbf16>
    %c32 = arith.constant 32 : index
    %c0_9 = arith.constant 0 : index
    %10 = vector.load %arg3[%c32, %c0_9] : memref<64x32xbf16, #tpu.memory_space<vmem>>, vector<32x32xbf16>
    %11 = arith.truncf %3 : vector<16x32xf32> to vector<16x32xbf16>
    %cst = arith.constant dense<0.000000e+00> : vector<16x32xf32>
    %12 = tpu.matmul %11, %9, %cst {dimension_numbers = #tpu.dot_dimension_numbers<[1], [0], [0], [1], [0, 0, 1, 1], [], []>} : vector<16x32xbf16>, vector<32x32xbf16>, vector<16x32xf32> -> vector<16x32xf32>
    %13 = arith.truncf %1 : vector<16x32xf32> to vector<16x32xbf16>
    %cst_10 = arith.constant dense<0.000000e+00> : vector<16x32xf32>
    %14 = tpu.matmul %13, %10, %cst_10 {dimension_numbers = #tpu.dot_dimension_numbers<[1], [0], [0], [1], [0, 0, 1, 1], [], []>} : vector<16x32xbf16>, vector<32x32xbf16>, vector<16x32xf32> -> vector<16x32xf32>
    %15 = arith.addf %12, %14 : vector<16x32xf32>
    %16 = vector.broadcast %5 : vector<1x32xf32> to vector<16x32xf32>
    %17 = arith.addf %15, %16 : vector<16x32xf32>
    %18 = arith.negf %17 : vector<16x32xf32>
    %19 = math.exp %18 : vector<16x32xf32>
    %cst_11 = arith.constant 1.000000e+00 : f32
    %20 = vector.broadcast %cst_11 : f32 to vector<16x32xf32>
    %21 = arith.addf %20, %19 : vector<16x32xf32>
    %22 = arith.divf %20, %21 : vector<16x32xf32>
    %23 = arith.mulf %22, %3 : vector<16x32xf32>
    %24 = arith.addf %23, %1 : vector<16x32xf32>
    %cst_12 = arith.constant dense<0.000000e+00> : vector<32xf32>
    %25 = vector.multi_reduction <add>, %24, %cst_12 [0] : vector<16x32xf32> to vector<32xf32>
    %26 = vector.shape_cast %25 : vector<32xf32> to vector<1x32xf32>
    %cst_13 = arith.constant 6.250000e-02 : f32
    %27 = vector.broadcast %cst_13 : f32 to vector<1x32xf32>
    %28 = arith.mulf %26, %27 : vector<1x32xf32>
    %29 = arith.mulf %28, %8 : vector<1x32xf32>
    %30 = vector.broadcast %29 : vector<1x32xf32> to vector<16x32xf32>
    %31 = arith.subf %24, %30 : vector<16x32xf32>
    %32 = arith.mulf %31, %31 : vector<16x32xf32>
    %cst_14 = arith.constant dense<0.000000e+00> : vector<32xf32>
    %33 = vector.multi_reduction <add>, %32, %cst_14 [0] : vector<16x32xf32> to vector<32xf32>
    %34 = vector.shape_cast %33 : vector<32xf32> to vector<1x32xf32>
    %cst_15 = arith.constant 6.250000e-02 : f32
    %35 = vector.broadcast %cst_15 : f32 to vector<1x32xf32>
    %36 = arith.mulf %34, %35 : vector<1x32xf32>
    %cst_16 = arith.constant 9.99999974E-6 : f32
    %37 = vector.broadcast %cst_16 : f32 to vector<1x32xf32>
    %38 = arith.addf %36, %37 : vector<1x32xf32>
    %39 = math.rsqrt %38 : vector<1x32xf32>
    %40 = vector.broadcast %6 : vector<1x32xf32> to vector<16x32xf32>
    %41 = arith.mulf %40, %31 : vector<16x32xf32>
    %42 = vector.broadcast %39 : vector<1x32xf32> to vector<16x32xf32>
    %43 = arith.mulf %41, %42 : vector<16x32xf32>
    %44 = vector.broadcast %7 : vector<1x32xf32> to vector<16x32xf32>
    %45 = arith.addf %43, %44 : vector<16x32xf32>
    %c0_17 = arith.constant 0 : index
    %c0_18 = arith.constant 0 : index
    %c0_19 = arith.constant 0 : index
    %46 = vector.load %arg5[%c0_17, %c0_18, %c0_19] : memref<1x16x32xf32, #tpu.memory_space<vmem>>, vector<1x16x32xf32>
    %47 = vector.shape_cast %46 : vector<1x16x32xf32> to vector<16x32xf32>
    %48 = vector.shape_cast %45 : vector<16x32xf32> to vector<1x16x32xf32>
    tpu.vector_store %arg5[%c0_17, %c0_18, %c0_19], %48 {strides = array<i32>} : memref<1x16x32xf32, #tpu.memory_space<vmem>>, vector<1x16x32xf32>,
    return
  }
  func.func @transform_0(%arg0: i32) -> (i32, i32, i32) {
    %c0_i32 = arith.constant 0 : i32
    %c0_i32_0 = arith.constant 0 : i32
    %c0_i32_1 = arith.constant 0 : i32
    return %arg0, %c0_i32, %c0_i32_0 : i32, i32, i32
  }
  func.func @transform_1(%arg0: i32) -> (i32, i32, i32) {
    %c0_i32 = arith.constant 0 : i32
    %c0_i32_0 = arith.constant 0 : i32
    %c0_i32_1 = arith.constant 0 : i32
    return %arg0, %c0_i32, %c0_i32_0 : i32, i32, i32
  }
  func.func @transform_2(%arg0: i32) -> (i32, i32) {
    %c0_i32 = arith.constant 0 : i32
    %c0_i32_0 = arith.constant 0 : i32
    %c0_i32_1 = arith.constant 0 : i32
    return %c0_i32, %c0_i32_0 : i32, i32
  }
  func.func @transform_3(%arg0: i32) -> (i32, i32) {
    %c0_i32 = arith.constant 0 : i32
    %c0_i32_0 = arith.constant 0 : i32
    %c0_i32_1 = arith.constant 0 : i32
    return %c0_i32, %c0_i32_0 : i32, i32
  }
  func.func @transform_4(%arg0: i32) -> (i32, i32, i32) {
    %c0_i32 = arith.constant 0 : i32
    %c0_i32_0 = arith.constant 0 : i32
    %c0_i32_1 = arith.constant 0 : i32
    return %arg0, %c0_i32, %c0_i32_0 : i32, i32, i32
  }
}

</mosaic_0001>

<bundles_post_ra>
// kernel: tpu_custom_call.1
= control target key start
LH: loop header
LB: loop body
LE: loop exit
PB: predicated region body
PF: predicated region fallthrough
CT: control target
= control target key end

     0   :  { %9 = vsyncpa [#allocation3], 0  ;;  %s1113_s0 = inlined_call_operand.hbm [shape: f32[8,16,32], index: 0, kind: input, shape index: {}]   ;;  %s1114_s1 = inlined_call_operand.hbm [shape: f32[8,16,32], index: 1, kind: input, shape index: {}]   ;;  %s1115_s2 = inlined_call_operand.vmem [shape: bf16[64,32], index: 2, kind: input, shape index: {}]   ;;  %s1116_s3 = inlined_call_operand.vmem [shape: f32[4,32], index: 3, kind: input, shape index: {}]   ;;  %s1117_s4 = inlined_call_operand.hbm [shape: f32[8,16,32], index: 4, kind: output, shape index: {}]  }
   0x1   :  { %11 = vsyncpa [#allocation3 + $0x1], 0 }
   0x2   :  { %12 = vsyncpa [#allocation6], 0 }
   0x3   :  { %14 = vsyncpa [#allocation6 + $0x1], 0 }
   0x4   :  { %15 = vsyncpa [#allocation4], 0 }
   0x5   :  { %17 = vsyncpa [#allocation4 + $0x1], 0  ;;  %s852_s15 = smov 0   ;;  %s854_s16 = smov 0  }
   0x6   :  { %s856_s17 = smov 0   ;;  %s858_s18 = smov 0  }
   0x7 LB: > { %s873_s19 = sadd.s32 4294967295, %s816_s18   ;;  %s564_s20 = sadd.s32 4294967294, %s816_s18   ;;  %s816_s18 = sphi %s858_s18, %s1132_s18   ;;  %s812_s17 = sphi %s856_s17, %s1131_s17   ;;  %s808_s16 = sphi %s854_s16, %s1130_s16   ;;  %s804_s15 = sphi %s852_s15, %s1129_s15  }
   0x8   : > { %s877_s21 = sadd.s32 1, %s816_s18   ;;  %s30_s22 = sadd.s32 1, %s812_s17 }
   0x9   : > { %s27_s23 = ssub.s32 %s816_s18, %s877_s21  ;;  %p37_p0 = scmp.ne.s32.totalorder %s812_s17, %s808_s16 }
   0xa   : > { %p28_p1 = scmp.eq.s32.totalorder %s27_s23, 0  ;;  %p38_p2 = scmp.eq.s32.totalorder %s816_s18, 0 }
   0xb   : > { %p43_p3 = scmp.ne.s32.totalorder %s808_s16, %s804_s15  ;;  %p44_p4 = scmp.eq.s32.totalorder %s873_s19, 0 }
   0xc   : > { %s889_s24 = scalar_select %p28_p1, %s812_s17, %s30_s22  }
   0xd   : > { %p891_p5 = por %p38_p2, %p37_p0  ;;  %p895_p6 = por %p44_p4, %p43_p3 }
   0xe   : > { %p135_p7 = scmp.eq.s32.totalorder %s873_s19, 7  ;;  %p141_p8 = scmp.eq.s32.totalorder %s564_s20, 7 }
   0xf   : > { %s1121_s26 = scalar_select %p895_p6, 1, 0 }
  0x10   : > { %p632_p9 = scmp.lt.s32.totalorder %s816_s18, 8  ;;  %p901_p10 = por %p135_p7, %p37_p0 }
  0x11   : > { %p905_p11 = por %p141_p8, %p43_p3  ;;  %s910_s29 = sand.u32 1, %s812_s17  }
  0x12   : > { %s1122_s27 = scalar_select %p901_p10, 1, 0 }
  0x13   : > { %s1123_s28 = scalar_select %p905_p11, 1, 0 }
  0x14   : > { %s590_s30 = sshll.u32 %s816_s18, 8  ;;  %s567_s5 = sshll.u32 %s910_s29, 4 }
  0x15   : > { %s919_s8 = scalar_lea.hbm %s1113_s0, %s590_s30  ;;  %s171_s9 = scalar_lea.vmem [#allocation2], %s567_s5 }
  0x16   : > { %s178_s10 = sshll.u32 %s171_s9, 4  ;;  %p925_p12 = pnand %p632_p9, %p891_p5  ;;  %s929_s10 = int_to_ptr.vmem [resolvable:$true] %s178_s10 }
  0x17   : > { %s168_s12 = scalar_lea.sflag [#allocation3], %s910_s29  ;;  %s686_s13 = scalar_lea.hbm %s919_s8, 256 }
  0x18   : > { %p687_p13 = scmp.ne.s32.totalorder %s919_s8, %s686_s13  ;;  %p688_p0 = pneg %p925_p12 }
  0x19   : > { %s691_s22 = scalar_lea.hbm %s1113_s0, 2048  ;;  %p692_p3 = scmp.lt.u32.totalorder %s919_s8, %s1113_s0 }
  0x1a   : > { %p689_p1 = pnand %p688_p0, %p687_p13  ;;  %p693_p4 = scmp.lt.u32.totalorder %s691_s22, %s686_s13 }
  0x1b   : > { %p695_p7 = scmp.lt.u32.totalorder %s686_s13, %s919_s8 }
  0x1c   : > { %p690_p2 = pneg %p689_p1  ;;  %p694_p5 = por %p693_p4, %p692_p3 }
  0x1e   : > { %p696_p8 = por %p695_p7, %p694_p5 }
  0x20   : > { %p697_p9 = pnand %p696_p8, %p690_p2 }
  0x22   : > { %700 = shalt.err (!%p697_p9)
}
  0x23   : > { %s701_s6 = scalar_lea.vmem %s929_s10, 256  ;;  %s818_s7 = smov [#allocation2]  }
  0x24   : > { %p702_p13 = scmp.ne.s32.totalorder %s929_s10, %s701_s6  ;;  %s706_s9 = sshll.u32 %s818_s7, 4  ;;  %s707_s9 = int_to_ptr.vmem [resolvable:$false] %s706_s9 }
  0x25   : > { %s708_s14 = scalar_lea.vmem %s707_s9, 512  ;;  %p709_p10 = scmp.lt.s32.totalorder %s929_s10, %s707_s9 }
  0x26   : > { %p704_p1 = pnand %p702_p13, %p688_p0  ;;  %p710_p3 = scmp.lt.s32.totalorder %s708_s14, %s701_s6 }
  0x28   : > { %p705_p11 = pneg %p704_p1  ;;  %p711_p4 = por %p710_p3, %p709_p10 }
  0x2a   : > { %p712_p5 = pnand %p711_p4, %p705_p11 }
  0x2c   : > { %715 = shalt.err (!%p712_p5)
}
  0x2d   : > { %s819_s13 = smov 128   ;;  %s820_s20 = smov 8  }
  0x2e   : > { %624 = dma.hbm_to_vmem [thread:$0]  (!%p925_p12), %s919_s8, 256, %s929_s10, %s168_s12, %s819_s13, %s819_s13, %s820_s20  }
  0x2f   : > { %p573_p10 = scmp.ge.s32.totalorder %s816_s18, 1  ;;  %p207_p11 = scmp.lt.s32.totalorder %s816_s18, 9 }
  0x30   : > { %s973_s6 = scalar_lea.hbm %s1114_s1, %s590_s30  ;;  %s192_s7 = scalar_lea.vmem [#allocation5], %s567_s5 }
  0x31   : > { %p964_p2 = pnand %p573_p10, %p207_p11  ;;  %s199_s9 = sshll.u32 %s192_s7, 4  ;;  %s977_s9 = int_to_ptr.vmem [resolvable:$true] %s199_s9 }
  0x32   : > { %s189_s8 = scalar_lea.sflag [#allocation6], %s910_s29  ;;  %s716_s10 = scalar_lea.hbm %s973_s6, 256 }
  0x33   : > { %p717_p7 = scmp.ne.s32.totalorder %s973_s6, %s716_s10  ;;  %s721_s30 = scalar_lea.hbm %s1114_s1, 2048 }
  0x34   : > { %p722_p13 = scmp.lt.u32.totalorder %s973_s6, %s1114_s1  ;;  %p723_p1 = scmp.lt.u32.totalorder %s721_s30, %s716_s10 }
  0x35   : > { %p719_p8 = pnand %p717_p7, %p688_p0  ;;  %p725_p4 = scmp.lt.u32.totalorder %s716_s10, %s973_s6 }
  0x36   : > { %p724_p3 = por %p723_p1, %p722_p13 }
  0x37   : > { %p720_p9 = pneg %p719_p8 }
  0x38   : > { %p726_p5 = por %p725_p4, %p724_p3 }
  0x3a   : > { %p727_p10 = pnand %p726_p5, %p720_p9 }
  0x3c   : > { %730 = shalt.err (!%p727_p10)
}
  0x3d   : > { %s731_s5 = scalar_lea.vmem %s977_s9, 256  ;;  %s821_s7 = smov [#allocation5]  }
  0x3e   : > { %p732_p11 = scmp.ne.s32.totalorder %s977_s9, %s731_s5  ;;  %s736_s12 = sshll.u32 %s821_s7, 4  ;;  %s737_s12 = int_to_ptr.vmem [resolvable:$false] %s736_s12 }
  0x3f   : > { %s738_s14 = scalar_lea.vmem %s737_s12, 512  ;;  %p739_p6 = scmp.lt.s32.totalorder %s977_s9, %s737_s12 }
  0x40   : > { %p734_p7 = pnand %p732_p11, %p688_p0  ;;  %p740_p13 = scmp.lt.s32.totalorder %s738_s14, %s731_s5 }
  0x42   : > { %p735_p8 = pneg %p734_p7  ;;  %p741_p1 = por %p740_p13, %p739_p6 }
  0x44   : > { %p742_p3 = pnand %p741_p1, %p735_p8 }
  0x46   : > { %745 = shalt.err (!%p742_p3)
}
  0x47   : > { %627 = dma.hbm_to_vmem [thread:$0]  (!%p925_p12), %s973_s6, 256, %s977_s9, %s189_s8, %s819_s13, %s819_s13, %s820_s20  }
  0x48   : > { %211 = sbr.rel (%p964_p2) target bundleno = 414 (0x19e), region = 36  ;;  %s1011_s10 = sand.u32 (!%p964_p2), 1, %s808_s16  }
  0x49   : > { %s1014_s30 = sshll.u32 (!%p964_p2), %s1011_s10, 4  ;;  %s214_s11 = scalar_lea.sflag (!%p964_p2), [#allocation3], %s1011_s10 }
  0x4a   : > { %s217_s23 = scalar_lea.vmem (!%p964_p2), [#allocation2], %s1014_s30  ;;  %p1126_p6 = scmp.ne.s32.totalorder (!%p964_p2), %s1121_s26, 0 }
  0x4f   : > { %791 = dma.done.wait (%p1126_p6), %s214_s11, 256  }
  0x50   : > { %793 = vsyncadd (%p1126_p6), %s214_s11, 4294967040  ;;  %s223_s29 = scalar_lea.sflag [#allocation6], %s1011_s10  ;;  %s226_s13 = scalar_lea.vmem [#allocation5], %s1014_s30 }
  0x51   : > { %795 = dma.done.wait (%p1126_p6), %s223_s29, 256  }
  0x52   : > { %797 = vsyncadd (%p1126_p6), %s223_s29, 4294967040  ;;  %v822_v0 = vmov 0.0   ;;  %vm823_vm0 = vmmov 0   ;;  %v672_v1 = vld [vmem:[%s1115_s2 + $0x10] sm:$0xff]   ;;  %v673_v2 = vld [vmem:[%s1115_s2] sm:$0xff]   ;;  %vm284_vm1 = vcmask 261120   ;;  %v385_v11 = vlaneseq }
  0x53   : > { %599 = vmatprep.subr.bf16.mxu0 %v822_v0  ;;  %607 = vmatprep.subr.bf16.mxu1 %v822_v0  ;;  %v674_v3 = vld [vmem:[%s1115_s2 + $0x18] sm:$0xff]   ;;  %v675_v4 = vld [vmem:[%s1115_s2 + $0x8] sm:$0xff]   ;;  %v257_v5 = vld [vmem:[%s217_s23] sm:$0xff]  ;;  %s592_s14 = sshll.u32 %s873_s19, 8  ;;  %s255_s11 = scalar_lea.vmem [#allocation7], %s1014_s30 }
  0x54   : > { %603 = vmatprep.mubr.msk.bf16.mxu0 %vm823_vm0, %v822_v0  ;;  %611 = vmatprep.mubr.msk.bf16.mxu1 %vm823_vm0, %v822_v0  ;;  %v258_v6 = vld [vmem:[%s217_s23 + $0x8] sm:$0xff]  ;;  %v259_v7 = vld [vmem:[%s226_s13] sm:$0xff]  ;;  %v1042_v12 = vshrl.u32 %v385_v11, 7  ;;  %s468_s23 = sshll.u32 %s255_s11, 4  ;;  %s1066_s20 = scalar_lea.hbm %s1117_s4, %s592_s14  ;;  %s1068_s23 = int_to_ptr.vmem [resolvable:$true] %s468_s23 }
  0x55   : > { %600 = vmatpush3.bf16.msra.mxu0 %v672_v1  ;;  %608 = vmatpush3.bf16.msra.mxu1 %v673_v2  ;;  %v271_v8 = vpack.c.bf16 %v258_v6, %v257_v5  ;;  %v260_v9 = vld [vmem:[%s226_s13 + $0x8] sm:$0xff]  ;;  %v1048_v14 = vld [vmem:[%s1116_s3] sm:$0xf]  ;;  %s455_s19 = scalar_lea.sflag [#allocation4], %s1011_s10  ;;  %s746_s30 = scalar_lea.vmem %s1068_s23, 256 }
  0x56   : > { %601 = vmatprep.subr.bf16.mxu0 %v822_v0  ;;  %609 = vmatprep.subr.bf16.mxu1 %v822_v0  ;;  %v270_v10 = vpack.c.bf16 %v260_v9, %v259_v7  ;;  %v387_v13 = vsub.s32 0, %v1042_v12  ;;  %v420_v49 = vsub.s32 3, %v1042_v12  ;;  %v440_v50 = vsub.s32 1, %v1042_v12  ;;  %p747_p12 = scmp.ne.s32.totalorder %s1068_s23, %s746_s30  ;;  %p1127_p0 = scmp.ne.s32.totalorder %s1122_s27, 0 }
  0x57   : > { %s824_s22 = smov [#allocation7]  }
  0x58   : > { %v388_v16 = vrot.slane %v1048_v14, %v387_v13  ;;  %v441_v53 = vrot.slane %v1048_v14, %v440_v50  ;;  %p748_p2 = pnand %p747_p12, %p1127_p0  ;;  %s750_s6 = sshll.u32 %s824_s22, 4  ;;  %s751_s6 = int_to_ptr.vmem [resolvable:$false] %s750_s6 }
  0x59   : > { %602 = vmatpush3.bf16.msra.mxu0 %v674_v3  ;;  %610 = vmatpush3.bf16.msra.mxu1 %v675_v4  ;;  %s752_s9 = scalar_lea.vmem %s751_s6, 512  ;;  %p753_p4 = scmp.lt.s32.totalorder %s1068_s23, %s751_s6 }
  0x5a   : > { %p749_p9 = pneg %p748_p2  ;;  %p754_p5 = scmp.lt.s32.totalorder %s752_s9, %s746_s30 }
  0x5c   : > { %604 = vmatmul.mubr.msk.bf16.vlgmr.msra.gmra.mrb[0].mxu0 %vm284_vm1, %v271_v8  ;;  %612 = vmatmul.mubr.msk.bf16.vlgmr.msra.gmra.mrb[0].mxu1 %vm284_vm1, %v270_v10  ;;  %v448_v8 = vsub.s32 2, %v1042_v12  ;;  %p755_p10 = por %p754_p5, %p753_p4 }
  0x5e   : > { %p756_p11 = pnand %p755_p10, %p749_p9 }
 0x12f   : > { %v322_v15 = vpop.f32.mrb[0].mxu0  ;;  %v378_v17 = vpop.f32.mrb[0].mxu1 }
 0x130   : > { %v605_v18 = vpop.f32.mrb[1].mxu0  ;;  %v379_v19 = vadd.f32 %v378_v17, %v322_v15  ;;  %v613_v20 = vpop.f32.mrb[1].mxu1 }
 0x131   : > { %v325_v21 = vpop.f32.mrb[2].mxu0  ;;  %v381_v22 = vpop.f32.mrb[2].mxu1 }
 0x132   : > { %v606_v23 = vpop.f32.mrb[3].mxu0  ;;  %v389_v24 = vadd.f32 %v388_v16, %v379_v19  ;;  %v382_v25 = vadd.f32 %v381_v22, %v325_v21  ;;  %v614_v26 = vpop.f32.mrb[3].mxu1 }
 0x134   : > { %v583_v27 = vmul.f32 -1.442695, %v389_v24  ;;  %v390_v28 = vadd.f32 %v388_v16, %v382_v25 }
 0x136   : > { %676 = vpow2.f32 %v583_v27  ;;  %v584_v29 = vmul.f32 -1.442695, %v390_v28 }
 0x138   : > { %678 = vpow2.f32 %v584_v29 }
 0x140   : > { %v677_v30 = vpop.eup %676 }
 0x141   : > { %v397_v31 = vadd.f32 1.0, %v677_v30 }
 0x142   : > { %v679_v32 = vpop.eup %678 }
 0x143   : > { %680 = vrcp.f32 %v397_v31  ;;  %v398_v33 = vadd.f32 1.0, %v679_v32 }
 0x145   : > { %682 = vrcp.f32 %v398_v33 }
 0x14d   : > { %v681_v34 = vpop.eup %680 }
 0x14e   : > { %v403_v35 = vmul.f32 %v681_v34, %v259_v7 }
 0x14f   : > { %v683_v36 = vpop.eup %682 }
 0x150   : > { %v405_v37 = vadd.f32 %v403_v35, %v257_v5  ;;  %v404_v38 = vmul.f32 %v683_v36, %v260_v9  ;;  %v449_v9 = vrot.slane %v1048_v14, %v448_v8 }
 0x152   : > { %v406_v39 = vadd.f32 %v404_v38, %v258_v6  ;;  %v407_v40 = vsel %vm284_vm1, %v405_v37, 0.0 }
 0x154   : > { %v408_v41 = vsel %vm284_vm1, %v406_v39, 0.0 }
 0x155   : > { %v409_v42 = vadd.f32 %v408_v41, %v407_v40 }
 0x157   : > { %v410_v43 = vrot.slane %v409_v42, 4 }
 0x159   : > { %v411_v44 = vadd.f32 %v410_v43, %v409_v42 }
 0x15b   : > { %v412_v45 = vrot.slane %v411_v44, 2 }
 0x15d   : > { %v413_v46 = vadd.f32 %v412_v45, %v411_v44 }
 0x15f   : > { %v414_v47 = vrot.slane %v413_v46, 1 }
 0x161   : > { %v415_v48 = vadd.f32 %v414_v47, %v413_v46 }
 0x163   : > { %v416_v51 = vmul.f32 0.0625, %v415_v48 }
 0x165   : > { %v417_v52 = vmul.f32 %v416_v51, %v1048_v14 }
 0x167   : > { %v421_v54 = vrot.slane %v417_v52, %v420_v49 }
 0x169   : > { %v422_v55 = vsub.f32 %v405_v37, %v421_v54  ;;  %v423_v56 = vsub.f32 %v406_v39, %v421_v54 }
 0x16b   : > { %v424_v57 = vmul.f32 %v422_v55, %v422_v55  ;;  %v425_v58 = vmul.f32 %v423_v56, %v423_v56  ;;  %v443_v59 = vmul.f32 %v441_v53, %v423_v56  ;;  %v442_v60 = vmul.f32 %v441_v53, %v422_v55 }
 0x16d   : > { %v426_v61 = vsel %vm284_vm1, %v424_v57, 0.0  ;;  %v427_v62 = vsel %vm284_vm1, %v425_v58, 0.0 }
 0x16e   : > { %v428_v63 = vadd.f32 %v427_v62, %v426_v61 }
 0x170   : > { %v429_v0 = vrot.slane %v428_v63, 4 }
 0x172   : > { %v430_v1 = vadd.f32 %v429_v0, %v428_v63 }
 0x174   : > { %v431_v2 = vrot.slane %v430_v1, 2 }
 0x176   : > { %v432_v3 = vadd.f32 %v431_v2, %v430_v1 }
 0x178   : > { %v433_v4 = vrot.slane %v432_v3, 1 }
 0x17a   : > { %v434_v5 = vadd.f32 %v433_v4, %v432_v3 }
 0x17c   : > { %v435_v6 = vmul.f32 0.0625, %v434_v5 }
 0x17e   : > { %v436_v7 = vadd.f32 1e-05, %v435_v6 }
 0x180   : > { %684 = vrsqrt.f32 %v436_v7 }
 0x18a   : > { %v685_v10 = vpop.eup %684 }
 0x18b   : > { %v444_v11 = vmul.f32 %v685_v10, %v442_v60  ;;  %v445_v13 = vmul.f32 %v685_v10, %v443_v59 }
 0x18d   : > { %v450_v12 = vadd.f32 %v449_v9, %v444_v11  ;;  %v451_v15 = vadd.f32 %v449_v9, %v445_v13 }
 0x18f   : > { %452 = vst.msk [vmem:[%s255_s11] sm:$0xff] %vm284_vm1, %v450_v12  ;;  %453 = vst.msk [vmem:[%s255_s11 + $0x8] sm:$0xff] %vm284_vm1, %v451_v15 }
 0x190   : > { %759 = shalt.err (!%p756_p11)
}
 0x191   : > { %s760_s8 = scalar_lea.hbm %s1066_s20, 256  ;;  %s764_s5 = scalar_lea.hbm %s1117_s4, 2048 }
 0x192   : > { %p761_p7 = scmp.ne.s32.totalorder %s1066_s20, %s760_s8  ;;  %p765_p1 = scmp.lt.u32.totalorder %s1066_s20, %s1117_s4 }
 0x193   : > { %p766_p3 = scmp.lt.u32.totalorder %s764_s5, %s760_s8  ;;  %p768_p12 = scmp.lt.u32.totalorder %s760_s8, %s1066_s20 }
 0x194   : > { %p762_p8 = pnand %p761_p7, %p1127_p0 }
 0x195   : > { %p767_p6 = por %p766_p3, %p765_p1 }
 0x196   : > { %p763_p13 = pneg %p762_p8 }
 0x197   : > { %p769_p2 = por %p768_p12, %p767_p6 }
 0x199   : > { %p770_p9 = pnand %p769_p2, %p763_p13 }
 0x19b   : > { %773 = shalt.err (!%p770_p9)
}
 0x19c   : > { %s825_s14 = smov 128   ;;  %s826_s11 = smov 8  }
 0x19d   : > { %619 = dma.vmem_to_hbm [thread:$0]  (%p1127_p0), %s1068_s23, 256, %s1066_s20, %s455_s19, %s825_s14, %s825_s14, %s826_s11  }
 0x19e PF: > { %p633_p4 = scmp.ge.s32.totalorder %s816_s18, 2  ;;  %s483_s29 = sand.u32 1, %s804_s15  }
 0x19f   : > { %p1128_p5 = scmp.ne.s32.totalorder %s1123_s28, 0  ;;  %s484_s13 = scalar_lea.sflag [#allocation4], %s483_s29 }
 0x1a1   : > { %p629_p10 = pnand %p633_p4, %p1128_p5 }
 0x1a3   : > { %799 = dma.done.wait (!%p629_p10), %s484_s13, 256  }
 0x1a4   : > { %801 = vsyncadd (!%p629_p10), %s484_s13, 4294967040  ;;  %p20_p11 = scmp.ge.s32.totalorder %s877_s21, 10   ;;  %s1129_s15 = smov %s808_s16 }
 0x1a5   : > { %s1130_s16 = smov %s812_s17  ;;  %s1131_s17 = smov %s889_s24 }
 0x1a6   : > { %s1132_s18 = smov %s877_s21  ;;  %22 = sbr.rel (!%p20_p11) target bundleno = 7 (0x7), region = 94 }
 0x1ad   :  { %489 = vsyncpa [#allocation3], 1 }
 0x1ae   :  { %491 = vsyncpa [#allocation3 + $0x1], 1 }
 0x1af   :  { %492 = vsyncpa [#allocation6], 1 }
 0x1b0   :  { %494 = vsyncpa [#allocation6 + $0x1], 1 }
 0x1b1   :  { %495 = vsyncpa [#allocation4], 1 }
 0x1b2   :  { %497 = vsyncpa [#allocation4 + $0x1], 1 }

</bundles_post_ra>
